<compile_context>
chip_gen: v7x
topology: tpu7x:2x2x1
jax: 0.10.0
libtpu: 0.0.40
codegen_flags: <defaults>
</compile_context>

<pallas_src>
import jax
import jax.numpy as jnp
from jax.experimental import pallas as pl
from jax.experimental.pallas import tpu as pltpu


_LANE = 128
_SUBLANE = 8
_TARGET_BLOCK_BYTES = 2 << 20      # ~2 MiB input blocks (review: 2-4 MiB sweet spot)
_MAX_THW = 16 * _LANE              # cap per-step lane-chunk unroll at 16 chunks


def _cdiv(a, b):
    return -(-a // b)


def _round_up(a, b):
    return _cdiv(a, b) * b


def _int_pow(x, n):
    """x**n for a small positive integer n via binary exponentiation (VPU only)."""
    result = None
    base = x
    while n > 0:
        if n & 1:
            result = base if result is None else result * base
        n >>= 1
        if n:
            base = base * base
    return result


def _choose_tiles(NC, HW, itemsize, block_bytes):
    """Pick (row_tile, spatial_tile) for the (NC, HW) view.

    Guarantees the (8,128)-or-full-dim rule on the last two dims of both the
    input block (row_tile, spatial_tile) and the output block (row_tile, 1).
    """
    row_bytes = HW * itemsize

    if _SUBLANE * row_bytes <= block_bytes:
        # At least 8 full spatial rows fit: keep rows whole -> one contiguous
        # HBM slab per DMA and a single reduction step.
        thw = HW
    else:
        # Spatial extent too large for whole rows: tile it with lane-aligned
        # chunks; the reduction runs over the last ("arbitrary") grid axis.
        thw = (block_bytes // (_SUBLANE * itemsize)) // _LANE * _LANE
        thw = max(_LANE, min(thw, _MAX_THW))

    if NC <= _SUBLANE:
        tbc = NC                                   # full row dim (always legal)
    else:
        tbc = block_bytes // max(thw * itemsize, 1)
        tbc = max(_SUBLANE, (tbc // _SUBLANE) * _SUBLANE)
        tbc = min(tbc, _round_up(NC, _SUBLANE))
        if tbc >= NC and NC >= 2 * _SUBLANE:
            # Keep >= 2 "parallel" row blocks so both v7x TensorCores get work.
            tbc = _round_up(_cdiv(NC, 2), _SUBLANE)
    return tbc, thw


def _make_gem_kernel(eps, hw_total, thw, multi_step, needs_mask, static_p):
    inv_hw = 1.0 / float(hw_total)
    n_chunks = thw // _LANE if multi_step else 0

    static_int = None
    if static_p is not None:
        sp = float(static_p)
        if sp.is_integer() and 1 <= int(sp) <= 16:
            static_int = int(sp)

    def _pow(x, p_scalar):
        # x ** p on the clamped (strictly positive) input.
        if static_int is not None:                 # fast path: VPU multiplies only
            return _int_pow(x, static_int)
        if static_p is not None:                   # static non-integer exponent
            return jnp.exp(float(static_p) * jnp.log(x))
        # Traced learned p (2 EUP transcendentals per element).
        return jnp.exp(p_scalar * jnp.log(x))

    def _root(m, p_scalar):
        # m ** (1/p); epilogue-only (O(N*C) work), m > 0 given clamp(min=eps).
        if static_p is not None:
            sp = float(static_p)
            if sp == 1.0:
                return m
            if sp == 2.0:
                return jnp.sqrt(m)
            return jnp.exp(jnp.log(m) * (1.0 / sp))
        return jnp.exp(jnp.log(m) * (1.0 / p_scalar))

    def _body(p_scalar, x_ref, o_ref, acc_ref):
        x = jnp.maximum(x_ref[...].astype(jnp.float32), eps)    # clamp(min=eps)
        xp = _pow(x, p_scalar)                                   # x ** p

        if not multi_step:
            # Whole spatial extent in one block: reduce & finalize directly,
            # no accumulator scratch needed.
            m = jnp.sum(xp, axis=-1, keepdims=True) * inv_hw
            o_ref[...] = _root(m, p_scalar).astype(o_ref.dtype)
            return

        k = pl.program_id(1)
        nk = pl.num_programs(1)

        @pl.when(k == 0)
        def _init():
            acc_ref[...] = jnp.zeros_like(acc_ref)

        def _accumulate(masked):
            # Lane-shaped partial sums: pure VPU adds over thw/128 chunks; the
            # cross-lane XLU reduce happens only once, in the finalize.
            if masked:
                lane = jax.lax.broadcasted_iota(jnp.int32, (1, _LANE), 1)
                base = k * thw
            partial = None
            for c in range(n_chunks):
                chunk = xp[:, c * _LANE:(c + 1) * _LANE]
                if masked:
                    chunk = jnp.where(base + c * _LANE + lane < hw_total,
                                      chunk, 0.0)
                partial = chunk if partial is None else partial + chunk
            acc_ref[...] += partial

        if needs_mask:
            # Ragged HW: mask only on the last spatial step; all other steps
            # run the unmasked hot loop (and can never see padded lanes).
            @pl.when(k < nk - 1)
            def _unmasked():
                _accumulate(False)

            @pl.when(k == nk - 1)
            def _masked():
                _accumulate(True)
        else:
            _accumulate(False)

        @pl.when(k == nk - 1)
        def _finalize():
            m = jnp.sum(acc_ref[...], axis=-1, keepdims=True) * inv_hw
            o_ref[...] = _root(m, p_scalar).astype(o_ref.dtype)

    # Build the concrete kernel signature (p ref only for the traced-p path,
    # accumulator scratch only for the multi-step spatial reduction).
    if static_p is not None:
        if multi_step:
            def kernel(x_ref, o_ref, acc_ref):
                _body(None, x_ref, o_ref, acc_ref)
        else:
            def kernel(x_ref, o_ref):
                _body(None, x_ref, o_ref, None)
    else:
        if multi_step:
            def kernel(p_ref, x_ref, o_ref, acc_ref):
                _body(p_ref[0], x_ref, o_ref, acc_ref)
        else:
            def kernel(p_ref, x_ref, o_ref):
                _body(p_ref[0], x_ref, o_ref, None)
    return kernel


def gem_pallas(x: jax.Array, p=3.0, eps: float = 1e-06, *,
               block_bytes: int = _TARGET_BLOCK_BYTES) -> jax.Array:
    """GeM pooling.  x: (N, C, H, W) -> (N, C, 1, 1).

    p may be a Python number (trace-time specialized: integer p uses a
    multiply-only fast path) or a jax array of shape (1,) (the learned
    nn.Parameter; uses exp(p*log(x)) in-kernel).
    """
    N, C, H, W = x.shape
    HW = H * W
    NC = N * C
    x2 = x.reshape(NC, HW)
    itemsize = x2.dtype.itemsize

    tbc, thw = _choose_tiles(NC, HW, itemsize, block_bytes)
    multi_step = thw < HW
    needs_mask = multi_step and (HW % thw != 0)
    static_p = float(p) if isinstance(p, (int, float)) else None

    kernel = _make_gem_kernel(float(eps), HW, thw, multi_step, needs_mask, static_p)

    grid = (pl.cdiv(NC, tbc), pl.cdiv(HW, thw))
    x_spec = pl.BlockSpec((tbc, thw), lambda i, k: (i, k))
    out_spec = pl.BlockSpec((tbc, 1), lambda i, k: (i, 0))      # resident across k
    if static_p is not None:
        in_specs = [x_spec]
    else:
        in_specs = [pl.BlockSpec(memory_space=pltpu.SMEM), x_spec]   # p scalar
    scratch = ([pltpu.VMEM((tbc, _LANE), jnp.float32)] if multi_step else [])

    call = pl.pallas_call(
        kernel,
        out_shape=jax.ShapeDtypeStruct((NC, 1), x.dtype),
        grid=grid,
        in_specs=in_specs,
        out_specs=out_spec,
        scratch_shapes=scratch,
        compiler_params=pltpu.CompilerParams(
            dimension_semantics=("parallel", "arbitrary")),
    )

    if static_p is not None:
        out = call(x2)
    else:
        p_arr = jnp.asarray(p, jnp.float32).reshape(1)
        out = call(p_arr, x2)
    return out.reshape(N, C, 1, 1)


def gem_reference(x, p, eps=1e-06):
    """Pure-JAX reference mirroring the PyTorch semantics (f32 math)."""
    xf = x.astype(jnp.float32)
    xp = jnp.power(jnp.maximum(xf, eps), p)
    m = jnp.mean(xp, axis=(-2, -1), keepdims=True)
    return jnp.power(m, 1.0 / p)


if __name__ == "__main__":
    eps = 1e-06
    key = jax.random.PRNGKey(0)
    k1, k2, k3 = jax.random.split(key, 3)

    # Case 1: learned (traced) p, f32, small NCHW -> general exp/log path.
    p_param = jnp.ones((1,), dtype=jnp.float32) * 3.0   # nn.Parameter(ones(1)*3)
    x1 = jax.random.uniform(k1, (2, 4, 16, 16), jnp.float32, 0.0, 2.0)
    y1 = gem_pallas(x1, p_param, eps)
    jax.block_until_ready(y1)
    r1 = gem_reference(x1, 3.0, eps)
    assert y1.shape == (2, 4, 1, 1), y1.shape
    assert jnp.allclose(y1, r1, rtol=1e-5, atol=1e-5), float(jnp.max(jnp.abs(y1 - r1)))

    # Case 2: static integer p fast path (VPU multiplies), N==1 "inference"
    # shape 7x7 -> exercises the parallel row split (2 blocks for v7x).
    x2 = jax.random.uniform(k2, (1, 256, 7, 7), jnp.float32, 0.0, 2.0)
    y2 = gem_pallas(x2, 3, eps)
    jax.block_until_ready(y2)
    r2 = gem_reference(x2, 3.0, eps)
    assert y2.shape == (1, 256, 1, 1), y2.shape
    assert jnp.allclose(y2, r2, rtol=1e-5, atol=1e-5), float(jnp.max(jnp.abs(y2 - r2)))

    # Case 3: bf16 input (halves HBM traffic; math still f32 in-kernel).
    x3 = x1.astype(jnp.bfloat16)
    y3 = gem_pallas(x3, 3, eps)
    jax.block_until_ready(y3)
    r3 = gem_reference(x3, 3.0, eps)
    assert y3.shape == (2, 4, 1, 1), y3.shape
    assert jnp.allclose(y3.astype(jnp.float32), r3, rtol=2e-2, atol=2e-2), \
        float(jnp.max(jnp.abs(y3.astype(jnp.float32) - r3)))

    # Case 4: forced multi-step spatial reduction with a ragged last tile
    # (exercises the lane-shaped accumulator + last-step-only mask), traced p.
    x4 = jax.random.uniform(k3, (1, 16, 20, 20), jnp.float32, 0.0, 2.0)
    y4 = gem_pallas(x4, p_param, eps, block_bytes=4096)
    jax.block_until_ready(y4)
    r4 = gem_reference(x4, 3.0, eps)
    assert y4.shape == (1, 16, 1, 1), y4.shape
    assert jnp.allclose(y4, r4, rtol=1e-5, atol=1e-5), float(jnp.max(jnp.abs(y4 - r4)))

    print("KERNEL_OK")
</pallas_src>

<mosaic_0001>
module attributes {stable_mosaic.version = 11 : i64} {
  func.func @kernel(%arg0: i32, %arg1: i32, %arg2: memref<1xf32, #tpu.memory_space<smem>>, %arg3: memref<8x256xf32, #tpu.memory_space<vmem>>, %arg4: memref<8x1xf32, #tpu.memory_space<vmem>>) attributes {dimension_semantics = [#tpu.dimension_semantics<parallel>, #tpu.dimension_semantics<arbitrary>], iteration_bounds = array<i64: 1, 1>, scalar_prefetch = 0 : i64, scratch_operands = 0 : i64, tpu.core_type = #tpu.core_type<tc>, window_params = [{transform_indices = @transform_0, window_bounds = array<i64: 1>}, {transform_indices = @transform_1, window_bounds = array<i64: 8, 256>}, {transform_indices = @transform_2, window_bounds = array<i64: 8, 1>}]} {
    %c0 = arith.constant 0 : index
    %0 = memref.load %arg2[%c0] : memref<1xf32, #tpu.memory_space<smem>>
    %c0_0 = arith.constant 0 : index
    %c0_1 = arith.constant 0 : index
    %1 = vector.load %arg3[%c0_0, %c0_1] : memref<8x256xf32, #tpu.memory_space<vmem>>, vector<8x256xf32>
    %cst = arith.constant 9.99999997E-7 : f32
    %2 = vector.broadcast %cst : f32 to vector<8x256xf32>
    %3 = arith.maximumf %1, %2 : vector<8x256xf32>
    %4 = math.log %3 : vector<8x256xf32>
    %5 = vector.broadcast %0 : f32 to vector<8x256xf32>
    %6 = arith.mulf %5, %4 : vector<8x256xf32>
    %7 = math.exp %6 : vector<8x256xf32>
    %cst_2 = arith.constant dense<0.000000e+00> : vector<8xf32>
    %8 = vector.multi_reduction <add>, %7, %cst_2 [1] : vector<8x256xf32> to vector<8xf32>
    %9 = vector.shape_cast %8 : vector<8xf32> to vector<8x1xf32>
    %cst_3 = arith.constant 3.906250e-03 : f32
    %10 = vector.broadcast %cst_3 : f32 to vector<8x1xf32>
    %11 = arith.mulf %9, %10 : vector<8x1xf32>
    %12 = math.log %11 : vector<8x1xf32>
    %cst_4 = arith.constant 1.000000e+00 : f32
    %13 = arith.divf %cst_4, %0 : f32
    %14 = vector.broadcast %13 : f32 to vector<8x1xf32>
    %15 = arith.mulf %12, %14 : vector<8x1xf32>
    %16 = math.exp %15 : vector<8x1xf32>
    %c0_5 = arith.constant 0 : index
    %c0_6 = arith.constant 0 : index
    %17 = vector.load %arg4[%c0_5, %c0_6] : memref<8x1xf32, #tpu.memory_space<vmem>>, vector<8x1xf32>
    tpu.vector_store %arg4[%c0_5, %c0_6], %16 {strides = array<i32>} : memref<8x1xf32, #tpu.memory_space<vmem>>, vector<8x1xf32>,
    return
  }
  func.func @transform_0(%arg0: i32, %arg1: i32) -> i32 {
    %c0_i32 = arith.constant 0 : i32
    %c0_i32_0 = arith.constant 0 : i32
    return %c0_i32 : i32
  }
  func.func @transform_1(%arg0: i32, %arg1: i32) -> (i32, i32) {
    %c0_i32 = arith.constant 0 : i32
    return %arg0, %arg1 : i32, i32
  }
  func.func @transform_2(%arg0: i32, %arg1: i32) -> (i32, i32) {
    %c0_i32 = arith.constant 0 : i32
    %c0_i32_0 = arith.constant 0 : i32
    return %arg0, %c0_i32 : i32, i32
  }
}

</mosaic_0001>

<bundles_post_ra>
// kernel: tpu_custom_call.1
= control target key start
LH: loop header
LB: loop body
LE: loop exit
PB: predicated region body
PF: predicated region fallthrough
CT: control target
= control target key end

     0   :  { %8 = vsyncpa [#allocation4], 0  ;;  %s101_s9 = smov [#allocation3]   ;;  %s135_s0 = inlined_call_operand.<no memory space> [shape: f32[1], index: 0, kind: input, shape index: {}]   ;;  %s136_s1 = inlined_call_operand.hbm [shape: f32[8,256], index: 1, kind: input, shape index: {}]   ;;  %s137_s2 = inlined_call_operand.vmem [shape: f32[8,1], index: 2, kind: output, shape index: {}]  }
   0x1   :  { %s17_s10 = sshll.u32 %s101_s9, 4  ;;  %s77_s13 = scalar_lea.hbm %s136_s1, 256  ;;  %s18_s10 = int_to_ptr.vmem [resolvable:$true] %s17_s10 }
   0x2   :  { %p78_p0 = scmp.ne.s32.totalorder %s136_s1, %s77_s13  ;;  %p81_p1 = scmp.lt.u32.totalorder %s77_s13, %s136_s1 }
   0x4   :  { %p83_p2 = pnand %p81_p1, %p78_p0 }
   0x6   :  { %86 = shalt.err (!%p83_p2)
}
   0x7   :  { %s87_s18 = scalar_lea.vmem %s18_s10, 256  ;;  %p92_p4 = scmp.lt.s32.totalorder %s18_s10, %s18_s10 }
   0x8   :  { %p88_p3 = scmp.ne.s32.totalorder %s18_s10, %s87_s18  ;;  %p93_p5 = scmp.lt.s32.totalorder %s87_s18, %s87_s18 }
   0xa   :  { %p94_p6 = por %p93_p5, %p92_p4 }
   0xc   :  { %p95_p7 = pnand %p94_p6, %p88_p3 }
   0xe   :  { %98 = shalt.err (!%p95_p7)
}
   0xf   :  { %20 = dma.hbm_to_vmem [thread:$0]  %s136_s1, 256, %s18_s10, [#allocation4]  }
  0x10   :  { %99 = dma.done.wait [#allocation4], 256  }
  0x11   :  { %100 = vsyncadd [#allocation4], 4294967040  ;;  %v33_v0 = vstv %s135_s0  ;;  %v25_v1 = vld [vmem:[#allocation3] sm:$0xff]  ;;  %v26_v2 = vld [vmem:[#allocation3 + $0x8] sm:$0xff]  ;;  %vm53_vm0 = vcmask 7168  }
  0x12   :  { %63 = vrcp.f32 %v33_v0  ;;  %v27_v3 = vmax.f32 %v25_v1, 1e-06  ;;  %v28_v4 = vmax.f32 %v26_v2, 1e-06 }
  0x14   :  { %65 = vlog2.f32 %v27_v3 }
  0x15   :  { %67 = vlog2.f32 %v28_v4 }
  0x1c   :  { %v64_v5 = vpop.eup %63 }
  0x1d   :  { %60 = vpush %v64_v5 }
  0x1e   :  { %v66_v6 = vpop.eup %65 }
  0x1f   :  { %v68_v7 = vpop.eup %67  ;;  %v30_v8 = vmul.f32 0.6931472, %v66_v6 }
  0x20   :  { %v32_v9 = vmul.f32 0.6931472, %v68_v7 }
  0x21   :  { %v34_v10 = vmul.f32 %v33_v0, %v30_v8 }
  0x22   :  { %v35_v11 = vmul.f32 %v33_v0, %v32_v9 }
  0x23   :  { %v36_v12 = vmul.f32 1.442695, %v34_v10 }
  0x24   :  { %v38_v13 = vmul.f32 1.442695, %v35_v11 }
  0x25   :  { %69 = vpow2.f32 %v36_v12 }
  0x26   :  { %71 = vpow2.f32 %v38_v13 }
  0x2f   :  { %v70_v14 = vpop.eup %69 }
  0x30   :  { %v72_v15 = vpop.eup %71 }
  0x31   :  { %v40_v16 = vadd.f32 %v72_v15, %v70_v14 }
  0x33   :  { %41 = vadd.xlane.f32.xlu0 %v40_v16 }
  0x4e   :  { %s61_s0 = spop %60 }
  0x4f   :  { %v49_v20 = vstv %s61_s0 }
  0xc0   :  { %v42_v17 = vpop.xlane.xlu0 %41 }
  0xc1   :  { %v43_v18 = vmul.f32 0.00390625, %v42_v17 }
  0xc3   :  { %73 = vlog2.f32 %v43_v18 }
  0xcd   :  { %v74_v19 = vpop.eup %73 }
  0xce   :  { %v45_v21 = vmul.f32 0.6931472, %v74_v19 }
  0xd0   :  { %v50_v22 = vmul.f32 %v49_v20, %v45_v21 }
  0xd2   :  { %v51_v23 = vmul.f32 1.442695, %v50_v22 }
  0xd4   :  { %75 = vpow2.f32 %v51_v23 }
  0xde   :  { %v76_v24 = vpop.eup %75 }
  0xdf   :  { %54 = vst.msk [vmem:[%s137_s2] sm:$0xff] %vm53_vm0, %v76_v24 }
  0xe0   :  { %59 = vsyncpa [#allocation4], 1 }

</bundles_post_ra>
